<compile_context>
chip_gen: v6e
topology: v6e:2x2x1
jax: 0.10.0
libtpu: 0.0.40
codegen_flags: <defaults>
</compile_context>

<pallas_src>
import functools
import math

import jax
import jax.numpy as jnp
from jax.experimental import pallas as pl
from jax.experimental.pallas import tpu as pltpu


def _rup(x, m):
    return ((x + m - 1) // m) * m


def _choose_bw(nw, C, stride):
    """Number of windows processed per grid step.

    Constraints:
      * (bw * stride) % 128 == 0 -> every window's lane offset within its block
        is static, so assembly needs only static lane rotations.
      * (bw * C) % 16 == 0       -> matmul / bf16 output rows stay tile aligned.
    Target ~256 matmul rows per step to amortize per-step (~0.35us) overhead.
    """
    lane_align = 128 // math.gcd(stride, 128)
    row_align = 16 // math.gcd(16, C)
    align = lane_align * row_align // math.gcd(lane_align, row_align)
    target_rows = 256
    bw = min(nw, max(1, target_rows // max(C, 1)))
    return max(align, _rup(bw, align))


def build_dft_matrix(window_size):
    """(Wp, 2*Fp) bf16 [cos | sin] real-DFT basis, zero-padded. Built once."""
    W = window_size
    F = W // 2 + 1
    Wp = _rup(W, 128)
    Fp = _rup(F, 128)
    n = jnp.arange(W, dtype=jnp.float32)[:, None]
    k = jnp.arange(F, dtype=jnp.float32)[None, :]
    ang = 2.0 * jnp.pi * n * k / W
    cs = jnp.zeros((Wp, 2 * Fp), jnp.float32)
    cs = cs.at[:W, :F].set(jnp.cos(ang))
    cs = cs.at[:W, Fp:Fp + F].set(jnp.sin(ang))   # sign irrelevant under |.|
    return cs.astype(jnp.bfloat16)


def _sliding_fft_kernel(x_ref, cs_ref, o_ref, xw_ref, *,
                        Wp, Fp, stride, bw, C, nT):
    """One batch element, one block of `bw` consecutive windows.

    x_ref : (nT, C, 128) f32  padded time series, 128-sample chunks on lanes
    cs_ref: (Wp, 2*Fp)  bf16  [cos | sin] DFT basis (rows >= W are zero)
    o_ref : (bw*C, Fp)  bf16  magnitudes, rows ordered (window, channel)
    xw_ref: (bw*C, Wp)  f32   scratch window matrix
    """
    i = pl.program_id(1)
    qbase = i * ((bw * stride) // 128)    # first 128-chunk of this window block
    lane = jax.lax.broadcasted_iota(jnp.int32, (C, 128), 1)

    # Assemble the (bw*C, Wp) window matrix. Lane shifts are static; the only
    # dynamic index is the chunk number on the leading (untiled) axis.
    for j in range(bw):
        r = (j * stride) % 128                      # static lane offset
        q0 = qbase + (j * stride) // 128
        for m in range(Wp // 128):
            qa = q0 + m
            if r == 0:
                piece = x_ref[qa]
            else:
                # The clamped chunk only ever feeds lanes >= W, which multiply
                # zero rows of the basis, so it cannot corrupt valid outputs.
                qb = jnp.minimum(qa + 1, nT - 1)
                a = pltpu.roll(x_ref[qa], 128 - r, axis=1)
                b = pltpu.roll(x_ref[qb], 128 - r, axis=1)
                piece = jnp.where(lane < 128 - r, a, b)
            xw_ref[j * C:(j + 1) * C, m * 128:(m + 1) * 128] = piece

    # One bf16 MXU matmul (f32 accumulation) + magnitude on the VPU/EUP.
    y = jnp.dot(xw_ref[...].astype(jnp.bfloat16), cs_ref[...],
                preferred_element_type=jnp.float32)
    re = y[:, :Fp]
    im = y[:, Fp:]
    o_ref[...] = jnp.sqrt(re * re + im * im).astype(o_ref.dtype)


@functools.partial(jax.jit, static_argnames=("window_size", "stride"))
def sliding_fft_forward(x, cs, *, window_size, stride):
    """x: (B, C, T) -> (B, nw, C * (window_size//2 + 1)), matching the module."""
    B, C, T = x.shape
    W = window_size
    F = W // 2 + 1
    nw = (T - W) // stride + 1
    Wp, twoFp = cs.shape
    Fp = twoFp // 2

    bw = _choose_bw(nw, C, stride)
    n_wb = pl.cdiv(nw, bw)
    nwp = n_wb * bw
    bm = bw * C

    # Pad the time axis so every window of every (possibly partial) block reads
    # valid, finite data, then put 128-sample chunks on the lane dim with the
    # chunk index on a leading, untiled axis: (B, nT, C, 128). This is the only
    # XLA pass over x (vs the previous 8x-expanded unfold + pad).
    Tpad = _rup(max(T, (nwp - 1) * stride + W), 128)
    nT = Tpad // 128
    xp = jnp.pad(x, ((0, 0), (0, 0), (0, Tpad - T)))
    xr = xp.reshape(B, C, nT, 128).transpose(0, 2, 1, 3)

    # NOTE: for very long T / very large window_size the per-batch series and
    # the DFT basis are kept fully VMEM-resident; tile T (with halo) and the
    # basis K dim if those ever exceed the VMEM budget (v7x: 64 MiB physical).
    vmem_need = (2 * nT * _rup(C, 8) * 128 * 4      # x block, double buffered
                 + 2 * Wp * twoFp * 2               # DFT basis, double buffered
                 + 2 * bm * Fp * 2                  # output block, double buffered
                 + bm * Wp * 4                      # window scratch
                 + 3 * bm * twoFp * 4)              # matmul result + temporaries
    vmem_limit = int(min(max(vmem_need + (4 << 20), 32 << 20), 128 << 20))

    kernel = functools.partial(_sliding_fft_kernel, Wp=Wp, Fp=Fp, stride=stride,
                               bw=bw, C=C, nT=nT)
    mag = pl.pallas_call(
        kernel,
        out_shape=jax.ShapeDtypeStruct((B, nwp * C, Fp), jnp.bfloat16),
        grid_spec=pltpu.PrefetchScalarGridSpec(
            num_scalar_prefetch=0,
            grid=(B, n_wb),
            in_specs=[
                pl.BlockSpec((None, nT, C, 128), lambda b, i: (b, 0, 0, 0)),
                pl.BlockSpec((Wp, twoFp), lambda b, i: (0, 0)),
            ],
            out_specs=pl.BlockSpec((None, bm, Fp), lambda b, i: (b, i, 0)),
            scratch_shapes=[pltpu.VMEM((bm, Wp), jnp.float32)]),
        compiler_params=pltpu.CompilerParams(
            dimension_semantics=("parallel", "parallel"),
            vmem_limit_bytes=vmem_limit),
    )(xr, cs)

    # Rows are already in (batch, window, channel) order: no transpose needed,
    # just drop padded windows / padded frequency lanes and cast back to f32.
    mag = mag.reshape(B, nwp, C, Fp)[:, :nw, :, :F]
    return mag.reshape(B, nw, C * F).astype(jnp.float32)


class SlidingFFT:
    """JAX/Pallas port of the torch SlidingFFT module (forward pass)."""

    def __init__(self, fs, window_duration, stride):
        self.fs = fs
        self.window_size = int(window_duration * fs)
        self.stride = stride
        self.cs = build_dft_matrix(self.window_size)   # bf16, padded, built once

    def __call__(self, x):
        return sliding_fft_forward(x, self.cs, window_size=self.window_size,
                                   stride=self.stride)


if __name__ == "__main__":
    FS = 64
    WINDOW_DURATION = 2.0
    STRIDE = 16
    B, C, T = 2, 4, 256

    mod = SlidingFFT(FS, WINDOW_DURATION, STRIDE)
    W = mod.window_size                      # 128
    F = W // 2 + 1                           # 65
    NW = (T - W) // STRIDE + 1               # 9

    x = jax.random.normal(jax.random.PRNGKey(0), (B, C, T), jnp.float32)
    out = jax.block_until_ready(mod(x))

    assert out.shape == (B, NW, C * F), out.shape
    assert bool(jnp.all(jnp.isfinite(out)))

    # Reference check (f32 FFT); tolerance covers bf16 MXU operand rounding.
    idx = jnp.arange(NW)[:, None] * STRIDE + jnp.arange(W)[None, :]
    windows = x[:, :, idx]
    ref = jnp.abs(jnp.fft.rfft(windows, axis=-1))
    ref = ref.transpose(0, 2, 1, 3).reshape(B, NW, C * F)
    scale = jnp.mean(jnp.abs(ref)) + 1e-6
    err = float(jnp.max(jnp.abs(out - ref)) / scale)
    assert err < 0.05, err

    print("KERNEL_OK")
</pallas_src>

<mosaic_0001>
module attributes {stable_mosaic.version = 11 : i64} {
  func.func @_sliding_fft_kernel(%arg0: i32, %arg1: i32, %arg2: memref<1x3x4x128xf32, #tpu.memory_space<vmem>>, %arg3: memref<128x256xbf16, #tpu.memory_space<vmem>>, %arg4: memref<1x64x128xbf16, #tpu.memory_space<vmem>>, %arg5: memref<64x128xf32, #tpu.memory_space<vmem>>) attributes {dimension_semantics = [#tpu.dimension_semantics<parallel>, #tpu.dimension_semantics<parallel>], iteration_bounds = array<i64: 2, 1>, scalar_prefetch = 0 : i64, scratch_operands = 1 : i64, tpu.core_type = #tpu.core_type<tc>, window_params = [{transform_indices = @transform_0, window_bounds = array<i64: 1, 3, 4, 128>}, {pipeline_mode = #tpu.pipeline_mode<synchronous>, transform_indices = @transform_1, window_bounds = array<i64: 128, 256>}, {transform_indices = @transform_2, window_bounds = array<i64: 1, 64, 128>}]} {
    %c2_i32 = arith.constant 2 : i32
    %0 = arith.muli %arg1, %c2_i32 : i32
    %1 = tpu.iota {dimensions = array<i32: 1>} : vector<4x128xi32>
    %c0_i32 = arith.constant 0 : i32
    %2 = arith.addi %0, %c0_i32 : i32
    %c0_i32_0 = arith.constant 0 : i32
    %3 = arith.addi %2, %c0_i32_0 : i32
    %c0 = arith.constant 0 : index
    %4 = arith.index_cast %3 : i32 to index
    %c0_1 = arith.constant 0 : index
    %c0_2 = arith.constant 0 : index
    %5 = vector.load %arg2[%c0, %4, %c0_1, %c0_2] : memref<1x3x4x128xf32, #tpu.memory_space<vmem>>, vector<1x1x4x128xf32>
    %6 = vector.shape_cast %5 : vector<1x1x4x128xf32> to vector<4x128xf32>
    %c0_3 = arith.constant 0 : index
    %c0_4 = arith.constant 0 : index
    %7 = vector.load %arg5[%c0_3, %c0_4] : memref<64x128xf32, #tpu.memory_space<vmem>>, vector<4x128xf32>
    tpu.vector_store %arg5[%c0_3, %c0_4], %6 {strides = array<i32>} : memref<64x128xf32, #tpu.memory_space<vmem>>, vector<4x128xf32>,
    %c0_i32_5 = arith.constant 0 : i32
    %8 = arith.addi %0, %c0_i32_5 : i32
    %c0_i32_6 = arith.constant 0 : i32
    %9 = arith.addi %8, %c0_i32_6 : i32
    %c1_i32 = arith.constant 1 : i32
    %10 = arith.addi %9, %c1_i32 : i32
    %c2_i32_7 = arith.constant 2 : i32
    %11 = arith.minsi %10, %c2_i32_7 : i32
    %c0_8 = arith.constant 0 : index
    %12 = arith.index_cast %9 : i32 to index
    %c0_9 = arith.constant 0 : index
    %c0_10 = arith.constant 0 : index
    %13 = vector.load %arg2[%c0_8, %12, %c0_9, %c0_10] : memref<1x3x4x128xf32, #tpu.memory_space<vmem>>, vector<1x1x4x128xf32>
    %14 = vector.shape_cast %13 : vector<1x1x4x128xf32> to vector<4x128xf32>
    %c112_i32 = arith.constant 112 : i32
    %15 = tpu.dynamic_rotate %14 by %c112_i32 dim 1 : vector<4x128xf32>, i32 -> vector<4x128xf32>
    %c0_11 = arith.constant 0 : index
    %16 = arith.index_cast %11 : i32 to index
    %c0_12 = arith.constant 0 : index
    %c0_13 = arith.constant 0 : index
    %17 = vector.load %arg2[%c0_11, %16, %c0_12, %c0_13] : memref<1x3x4x128xf32, #tpu.memory_space<vmem>>, vector<1x1x4x128xf32>
    %18 = vector.shape_cast %17 : vector<1x1x4x128xf32> to vector<4x128xf32>
    %c112_i32_14 = arith.constant 112 : i32
    %19 = tpu.dynamic_rotate %18 by %c112_i32_14 dim 1 : vector<4x128xf32>, i32 -> vector<4x128xf32>
    %c112_i32_15 = arith.constant 112 : i32
    %20 = vector.broadcast %c112_i32_15 : i32 to vector<4x128xi32>
    %21 = arith.cmpi slt, %1, %20 : vector<4x128xi32>
    %22 = arith.select %21, %15, %19 : vector<4x128xi1>, vector<4x128xf32>
    %c4 = arith.constant 4 : index
    %c0_16 = arith.constant 0 : index
    %23 = vector.load %arg5[%c4, %c0_16] : memref<64x128xf32, #tpu.memory_space<vmem>>, vector<4x128xf32>
    tpu.vector_store %arg5[%c4, %c0_16], %22 {strides = array<i32>} : memref<64x128xf32, #tpu.memory_space<vmem>>, vector<4x128xf32>,
    %c0_i32_17 = arith.constant 0 : i32
    %24 = arith.addi %0, %c0_i32_17 : i32
    %c0_i32_18 = arith.constant 0 : i32
    %25 = arith.addi %24, %c0_i32_18 : i32
    %c1_i32_19 = arith.constant 1 : i32
    %26 = arith.addi %25, %c1_i32_19 : i32
    %c2_i32_20 = arith.constant 2 : i32
    %27 = arith.minsi %26, %c2_i32_20 : i32
    %c0_21 = arith.constant 0 : index
    %28 = arith.index_cast %25 : i32 to index
    %c0_22 = arith.constant 0 : index
    %c0_23 = arith.constant 0 : index
    %29 = vector.load %arg2[%c0_21, %28, %c0_22, %c0_23] : memref<1x3x4x128xf32, #tpu.memory_space<vmem>>, vector<1x1x4x128xf32>
    %30 = vector.shape_cast %29 : vector<1x1x4x128xf32> to vector<4x128xf32>
    %c96_i32 = arith.constant 96 : i32
    %31 = tpu.dynamic_rotate %30 by %c96_i32 dim 1 : vector<4x128xf32>, i32 -> vector<4x128xf32>
    %c0_24 = arith.constant 0 : index
    %32 = arith.index_cast %27 : i32 to index
    %c0_25 = arith.constant 0 : index
    %c0_26 = arith.constant 0 : index
    %33 = vector.load %arg2[%c0_24, %32, %c0_25, %c0_26] : memref<1x3x4x128xf32, #tpu.memory_space<vmem>>, vector<1x1x4x128xf32>
    %34 = vector.shape_cast %33 : vector<1x1x4x128xf32> to vector<4x128xf32>
    %c96_i32_27 = arith.constant 96 : i32
    %35 = tpu.dynamic_rotate %34 by %c96_i32_27 dim 1 : vector<4x128xf32>, i32 -> vector<4x128xf32>
    %c96_i32_28 = arith.constant 96 : i32
    %36 = vector.broadcast %c96_i32_28 : i32 to vector<4x128xi32>
    %37 = arith.cmpi slt, %1, %36 : vector<4x128xi32>
    %38 = arith.select %37, %31, %35 : vector<4x128xi1>, vector<4x128xf32>
    %c8 = arith.constant 8 : index
    %c0_29 = arith.constant 0 : index
    %39 = vector.load %arg5[%c8, %c0_29] : memref<64x128xf32, #tpu.memory_space<vmem>>, vector<4x128xf32>
    tpu.vector_store %arg5[%c8, %c0_29], %38 {strides = array<i32>} : memref<64x128xf32, #tpu.memory_space<vmem>>, vector<4x128xf32>,
    %c0_i32_30 = arith.constant 0 : i32
    %40 = arith.addi %0, %c0_i32_30 : i32
    %c0_i32_31 = arith.constant 0 : i32
    %41 = arith.addi %40, %c0_i32_31 : i32
    %c1_i32_32 = arith.constant 1 : i32
    %42 = arith.addi %41, %c1_i32_32 : i32
    %c2_i32_33 = arith.constant 2 : i32
    %43 = arith.minsi %42, %c2_i32_33 : i32
    %c0_34 = arith.constant 0 : index
    %44 = arith.index_cast %41 : i32 to index
    %c0_35 = arith.constant 0 : index
    %c0_36 = arith.constant 0 : index
    %45 = vector.load %arg2[%c0_34, %44, %c0_35, %c0_36] : memref<1x3x4x128xf32, #tpu.memory_space<vmem>>, vector<1x1x4x128xf32>
    %46 = vector.shape_cast %45 : vector<1x1x4x128xf32> to vector<4x128xf32>
    %c80_i32 = arith.constant 80 : i32
    %47 = tpu.dynamic_rotate %46 by %c80_i32 dim 1 : vector<4x128xf32>, i32 -> vector<4x128xf32>
    %c0_37 = arith.constant 0 : index
    %48 = arith.index_cast %43 : i32 to index
    %c0_38 = arith.constant 0 : index
    %c0_39 = arith.constant 0 : index
    %49 = vector.load %arg2[%c0_37, %48, %c0_38, %c0_39] : memref<1x3x4x128xf32, #tpu.memory_space<vmem>>, vector<1x1x4x128xf32>
    %50 = vector.shape_cast %49 : vector<1x1x4x128xf32> to vector<4x128xf32>
    %c80_i32_40 = arith.constant 80 : i32
    %51 = tpu.dynamic_rotate %50 by %c80_i32_40 dim 1 : vector<4x128xf32>, i32 -> vector<4x128xf32>
    %c80_i32_41 = arith.constant 80 : i32
    %52 = vector.broadcast %c80_i32_41 : i32 to vector<4x128xi32>
    %53 = arith.cmpi slt, %1, %52 : vector<4x128xi32>
    %54 = arith.select %53, %47, %51 : vector<4x128xi1>, vector<4x128xf32>
    %c12 = arith.constant 12 : index
    %c0_42 = arith.constant 0 : index
    %55 = vector.load %arg5[%c12, %c0_42] : memref<64x128xf32, #tpu.memory_space<vmem>>, vector<4x128xf32>
    tpu.vector_store %arg5[%c12, %c0_42], %54 {strides = array<i32>} : memref<64x128xf32, #tpu.memory_space<vmem>>, vector<4x128xf32>,
    %c0_i32_43 = arith.constant 0 : i32
    %56 = arith.addi %0, %c0_i32_43 : i32
    %c0_i32_44 = arith.constant 0 : i32
    %57 = arith.addi %56, %c0_i32_44 : i32
    %c1_i32_45 = arith.constant 1 : i32
    %58 = arith.addi %57, %c1_i32_45 : i32
    %c2_i32_46 = arith.constant 2 : i32
    %59 = arith.minsi %58, %c2_i32_46 : i32
    %c0_47 = arith.constant 0 : index
    %60 = arith.index_cast %57 : i32 to index
    %c0_48 = arith.constant 0 : index
    %c0_49 = arith.constant 0 : index
    %61 = vector.load %arg2[%c0_47, %60, %c0_48, %c0_49] : memref<1x3x4x128xf32, #tpu.memory_space<vmem>>, vector<1x1x4x128xf32>
    %62 = vector.shape_cast %61 : vector<1x1x4x128xf32> to vector<4x128xf32>
    %c64_i32 = arith.constant 64 : i32
    %63 = tpu.dynamic_rotate %62 by %c64_i32 dim 1 : vector<4x128xf32>, i32 -> vector<4x128xf32>
    %c0_50 = arith.constant 0 : index
    %64 = arith.index_cast %59 : i32 to index
    %c0_51 = arith.constant 0 : index
    %c0_52 = arith.constant 0 : index
    %65 = vector.load %arg2[%c0_50, %64, %c0_51, %c0_52] : memref<1x3x4x128xf32, #tpu.memory_space<vmem>>, vector<1x1x4x128xf32>
    %66 = vector.shape_cast %65 : vector<1x1x4x128xf32> to vector<4x128xf32>
    %c64_i32_53 = arith.constant 64 : i32
    %67 = tpu.dynamic_rotate %66 by %c64_i32_53 dim 1 : vector<4x128xf32>, i32 -> vector<4x128xf32>
    %c64_i32_54 = arith.constant 64 : i32
    %68 = vector.broadcast %c64_i32_54 : i32 to vector<4x128xi32>
    %69 = arith.cmpi slt, %1, %68 : vector<4x128xi32>
    %70 = arith.select %69, %63, %67 : vector<4x128xi1>, vector<4x128xf32>
    %c16 = arith.constant 16 : index
    %c0_55 = arith.constant 0 : index
    %71 = vector.load %arg5[%c16, %c0_55] : memref<64x128xf32, #tpu.memory_space<vmem>>, vector<4x128xf32>
    tpu.vector_store %arg5[%c16, %c0_55], %70 {strides = array<i32>} : memref<64x128xf32, #tpu.memory_space<vmem>>, vector<4x128xf32>,
    %c0_i32_56 = arith.constant 0 : i32
    %72 = arith.addi %0, %c0_i32_56 : i32
    %c0_i32_57 = arith.constant 0 : i32
    %73 = arith.addi %72, %c0_i32_57 : i32
    %c1_i32_58 = arith.constant 1 : i32
    %74 = arith.addi %73, %c1_i32_58 : i32
    %c2_i32_59 = arith.constant 2 : i32
    %75 = arith.minsi %74, %c2_i32_59 : i32
    %c0_60 = arith.constant 0 : index
    %76 = arith.index_cast %73 : i32 to index
    %c0_61 = arith.constant 0 : index
    %c0_62 = arith.constant 0 : index
    %77 = vector.load %arg2[%c0_60, %76, %c0_61, %c0_62] : memref<1x3x4x128xf32, #tpu.memory_space<vmem>>, vector<1x1x4x128xf32>
    %78 = vector.shape_cast %77 : vector<1x1x4x128xf32> to vector<4x128xf32>
    %c48_i32 = arith.constant 48 : i32
    %79 = tpu.dynamic_rotate %78 by %c48_i32 dim 1 : vector<4x128xf32>, i32 -> vector<4x128xf32>
    %c0_63 = arith.constant 0 : index
    %80 = arith.index_cast %75 : i32 to index
    %c0_64 = arith.constant 0 : index
    %c0_65 = arith.constant 0 : index
    %81 = vector.load %arg2[%c0_63, %80, %c0_64, %c0_65] : memref<1x3x4x128xf32, #tpu.memory_space<vmem>>, vector<1x1x4x128xf32>
    %82 = vector.shape_cast %81 : vector<1x1x4x128xf32> to vector<4x128xf32>
    %c48_i32_66 = arith.constant 48 : i32
    %83 = tpu.dynamic_rotate %82 by %c48_i32_66 dim 1 : vector<4x128xf32>, i32 -> vector<4x128xf32>
    %c48_i32_67 = arith.constant 48 : i32
    %84 = vector.broadcast %c48_i32_67 : i32 to vector<4x128xi32>
    %85 = arith.cmpi slt, %1, %84 : vector<4x128xi32>
    %86 = arith.select %85, %79, %83 : vector<4x128xi1>, vector<4x128xf32>
    %c20 = arith.constant 20 : index
    %c0_68 = arith.constant 0 : index
    %87 = vector.load %arg5[%c20, %c0_68] : memref<64x128xf32, #tpu.memory_space<vmem>>, vector<4x128xf32>
    tpu.vector_store %arg5[%c20, %c0_68], %86 {strides = array<i32>} : memref<64x128xf32, #tpu.memory_space<vmem>>, vector<4x128xf32>,
    %c0_i32_69 = arith.constant 0 : i32
    %88 = arith.addi %0, %c0_i32_69 : i32
    %c0_i32_70 = arith.constant 0 : i32
    %89 = arith.addi %88, %c0_i32_70 : i32
    %c1_i32_71 = arith.constant 1 : i32
    %90 = arith.addi %89, %c1_i32_71 : i32
    %c2_i32_72 = arith.constant 2 : i32
    %91 = arith.minsi %90, %c2_i32_72 : i32
    %c0_73 = arith.constant 0 : index
    %92 = arith.index_cast %89 : i32 to index
    %c0_74 = arith.constant 0 : index
    %c0_75 = arith.constant 0 : index
    %93 = vector.load %arg2[%c0_73, %92, %c0_74, %c0_75] : memref<1x3x4x128xf32, #tpu.memory_space<vmem>>, vector<1x1x4x128xf32>
    %94 = vector.shape_cast %93 : vector<1x1x4x128xf32> to vector<4x128xf32>
    %c32_i32 = arith.constant 32 : i32
    %95 = tpu.dynamic_rotate %94 by %c32_i32 dim 1 : vector<4x128xf32>, i32 -> vector<4x128xf32>
    %c0_76 = arith.constant 0 : index
    %96 = arith.index_cast %91 : i32 to index
    %c0_77 = arith.constant 0 : index
    %c0_78 = arith.constant 0 : index
    %97 = vector.load %arg2[%c0_76, %96, %c0_77, %c0_78] : memref<1x3x4x128xf32, #tpu.memory_space<vmem>>, vector<1x1x4x128xf32>
    %98 = vector.shape_cast %97 : vector<1x1x4x128xf32> to vector<4x128xf32>
    %c32_i32_79 = arith.constant 32 : i32
    %99 = tpu.dynamic_rotate %98 by %c32_i32_79 dim 1 : vector<4x128xf32>, i32 -> vector<4x128xf32>
    %c32_i32_80 = arith.constant 32 : i32
    %100 = vector.broadcast %c32_i32_80 : i32 to vector<4x128xi32>
    %101 = arith.cmpi slt, %1, %100 : vector<4x128xi32>
    %102 = arith.select %101, %95, %99 : vector<4x128xi1>, vector<4x128xf32>
    %c24 = arith.constant 24 : index
    %c0_81 = arith.constant 0 : index
    %103 = vector.load %arg5[%c24, %c0_81] : memref<64x128xf32, #tpu.memory_space<vmem>>, vector<4x128xf32>
    tpu.vector_store %arg5[%c24, %c0_81], %102 {strides = array<i32>} : memref<64x128xf32, #tpu.memory_space<vmem>>, vector<4x128xf32>,
    %c0_i32_82 = arith.constant 0 : i32
    %104 = arith.addi %0, %c0_i32_82 : i32
    %c0_i32_83 = arith.constant 0 : i32
    %105 = arith.addi %104, %c0_i32_83 : i32
    %c1_i32_84 = arith.constant 1 : i32
    %106 = arith.addi %105, %c1_i32_84 : i32
    %c2_i32_85 = arith.constant 2 : i32
    %107 = arith.minsi %106, %c2_i32_85 : i32
    %c0_86 = arith.constant 0 : index
    %108 = arith.index_cast %105 : i32 to index
    %c0_87 = arith.constant 0 : index
    %c0_88 = arith.constant 0 : index
    %109 = vector.load %arg2[%c0_86, %108, %c0_87, %c0_88] : memref<1x3x4x128xf32, #tpu.memory_space<vmem>>, vector<1x1x4x128xf32>
    %110 = vector.shape_cast %109 : vector<1x1x4x128xf32> to vector<4x128xf32>
    %c16_i32 = arith.constant 16 : i32
    %111 = tpu.dynamic_rotate %110 by %c16_i32 dim 1 : vector<4x128xf32>, i32 -> vector<4x128xf32>
    %c0_89 = arith.constant 0 : index
    %112 = arith.index_cast %107 : i32 to index
    %c0_90 = arith.constant 0 : index
    %c0_91 = arith.constant 0 : index
    %113 = vector.load %arg2[%c0_89, %112, %c0_90, %c0_91] : memref<1x3x4x128xf32, #tpu.memory_space<vmem>>, vector<1x1x4x128xf32>
    %114 = vector.shape_cast %113 : vector<1x1x4x128xf32> to vector<4x128xf32>
    %c16_i32_92 = arith.constant 16 : i32
    %115 = tpu.dynamic_rotate %114 by %c16_i32_92 dim 1 : vector<4x128xf32>, i32 -> vector<4x128xf32>
    %c16_i32_93 = arith.constant 16 : i32
    %116 = vector.broadcast %c16_i32_93 : i32 to vector<4x128xi32>
    %117 = arith.cmpi slt, %1, %116 : vector<4x128xi32>
    %118 = arith.select %117, %111, %115 : vector<4x128xi1>, vector<4x128xf32>
    %c28 = arith.constant 28 : index
    %c0_94 = arith.constant 0 : index
    %119 = vector.load %arg5[%c28, %c0_94] : memref<64x128xf32, #tpu.memory_space<vmem>>, vector<4x128xf32>
    tpu.vector_store %arg5[%c28, %c0_94], %118 {strides = array<i32>} : memref<64x128xf32, #tpu.memory_space<vmem>>, vector<4x128xf32>,
    %c1_i32_95 = arith.constant 1 : i32
    %120 = arith.addi %0, %c1_i32_95 : i32
    %c0_i32_96 = arith.constant 0 : i32
    %121 = arith.addi %120, %c0_i32_96 : i32
    %c0_97 = arith.constant 0 : index
    %122 = arith.index_cast %121 : i32 to index
    %c0_98 = arith.constant 0 : index
    %c0_99 = arith.constant 0 : index
    %123 = vector.load %arg2[%c0_97, %122, %c0_98, %c0_99] : memref<1x3x4x128xf32, #tpu.memory_space<vmem>>, vector<1x1x4x128xf32>
    %124 = vector.shape_cast %123 : vector<1x1x4x128xf32> to vector<4x128xf32>
    %c32 = arith.constant 32 : index
    %c0_100 = arith.constant 0 : index
    %125 = vector.load %arg5[%c32, %c0_100] : memref<64x128xf32, #tpu.memory_space<vmem>>, vector<4x128xf32>
    tpu.vector_store %arg5[%c32, %c0_100], %124 {strides = array<i32>} : memref<64x128xf32, #tpu.memory_space<vmem>>, vector<4x128xf32>,
    %c1_i32_101 = arith.constant 1 : i32
    %126 = arith.addi %0, %c1_i32_101 : i32
    %c0_i32_102 = arith.constant 0 : i32
    %127 = arith.addi %126, %c0_i32_102 : i32
    %c1_i32_103 = arith.constant 1 : i32
    %128 = arith.addi %127, %c1_i32_103 : i32
    %c2_i32_104 = arith.constant 2 : i32
    %129 = arith.minsi %128, %c2_i32_104 : i32
    %c0_105 = arith.constant 0 : index
    %130 = arith.index_cast %127 : i32 to index
    %c0_106 = arith.constant 0 : index
    %c0_107 = arith.constant 0 : index
    %131 = vector.load %arg2[%c0_105, %130, %c0_106, %c0_107] : memref<1x3x4x128xf32, #tpu.memory_space<vmem>>, vector<1x1x4x128xf32>
    %132 = vector.shape_cast %131 : vector<1x1x4x128xf32> to vector<4x128xf32>
    %c112_i32_108 = arith.constant 112 : i32
    %133 = tpu.dynamic_rotate %132 by %c112_i32_108 dim 1 : vector<4x128xf32>, i32 -> vector<4x128xf32>
    %c0_109 = arith.constant 0 : index
    %134 = arith.index_cast %129 : i32 to index
    %c0_110 = arith.constant 0 : index
    %c0_111 = arith.constant 0 : index
    %135 = vector.load %arg2[%c0_109, %134, %c0_110, %c0_111] : memref<1x3x4x128xf32, #tpu.memory_space<vmem>>, vector<1x1x4x128xf32>
    %136 = vector.shape_cast %135 : vector<1x1x4x128xf32> to vector<4x128xf32>
    %c112_i32_112 = arith.constant 112 : i32
    %137 = tpu.dynamic_rotate %136 by %c112_i32_112 dim 1 : vector<4x128xf32>, i32 -> vector<4x128xf32>
    %c112_i32_113 = arith.constant 112 : i32
    %138 = vector.broadcast %c112_i32_113 : i32 to vector<4x128xi32>
    %139 = arith.cmpi slt, %1, %138 : vector<4x128xi32>
    %140 = arith.select %139, %133, %137 : vector<4x128xi1>, vector<4x128xf32>
    %c36 = arith.constant 36 : index
    %c0_114 = arith.constant 0 : index
    %141 = vector.load %arg5[%c36, %c0_114] : memref<64x128xf32, #tpu.memory_space<vmem>>, vector<4x128xf32>
    tpu.vector_store %arg5[%c36, %c0_114], %140 {strides = array<i32>} : memref<64x128xf32, #tpu.memory_space<vmem>>, vector<4x128xf32>,
    %c1_i32_115 = arith.constant 1 : i32
    %142 = arith.addi %0, %c1_i32_115 : i32
    %c0_i32_116 = arith.constant 0 : i32
    %143 = arith.addi %142, %c0_i32_116 : i32
    %c1_i32_117 = arith.constant 1 : i32
    %144 = arith.addi %143, %c1_i32_117 : i32
    %c2_i32_118 = arith.constant 2 : i32
    %145 = arith.minsi %144, %c2_i32_118 : i32
    %c0_119 = arith.constant 0 : index
    %146 = arith.index_cast %143 : i32 to index
    %c0_120 = arith.constant 0 : index
    %c0_121 = arith.constant 0 : index
    %147 = vector.load %arg2[%c0_119, %146, %c0_120, %c0_121] : memref<1x3x4x128xf32, #tpu.memory_space<vmem>>, vector<1x1x4x128xf32>
    %148 = vector.shape_cast %147 : vector<1x1x4x128xf32> to vector<4x128xf32>
    %c96_i32_122 = arith.constant 96 : i32
    %149 = tpu.dynamic_rotate %148 by %c96_i32_122 dim 1 : vector<4x128xf32>, i32 -> vector<4x128xf32>
    %c0_123 = arith.constant 0 : index
    %150 = arith.index_cast %145 : i32 to index
    %c0_124 = arith.constant 0 : index
    %c0_125 = arith.constant 0 : index
    %151 = vector.load %arg2[%c0_123, %150, %c0_124, %c0_125] : memref<1x3x4x128xf32, #tpu.memory_space<vmem>>, vector<1x1x4x128xf32>
    %152 = vector.shape_cast %151 : vector<1x1x4x128xf32> to vector<4x128xf32>
    %c96_i32_126 = arith.constant 96 : i32
    %153 = tpu.dynamic_rotate %152 by %c96_i32_126 dim 1 : vector<4x128xf32>, i32 -> vector<4x128xf32>
    %c96_i32_127 = arith.constant 96 : i32
    %154 = vector.broadcast %c96_i32_127 : i32 to vector<4x128xi32>
    %155 = arith.cmpi slt, %1, %154 : vector<4x128xi32>
    %156 = arith.select %155, %149, %153 : vector<4x128xi1>, vector<4x128xf32>
    %c40 = arith.constant 40 : index
    %c0_128 = arith.constant 0 : index
    %157 = vector.load %arg5[%c40, %c0_128] : memref<64x128xf32, #tpu.memory_space<vmem>>, vector<4x128xf32>
    tpu.vector_store %arg5[%c40, %c0_128], %156 {strides = array<i32>} : memref<64x128xf32, #tpu.memory_space<vmem>>, vector<4x128xf32>,
    %c1_i32_129 = arith.constant 1 : i32
    %158 = arith.addi %0, %c1_i32_129 : i32
    %c0_i32_130 = arith.constant 0 : i32
    %159 = arith.addi %158, %c0_i32_130 : i32
    %c1_i32_131 = arith.constant 1 : i32
    %160 = arith.addi %159, %c1_i32_131 : i32
    %c2_i32_132 = arith.constant 2 : i32
    %161 = arith.minsi %160, %c2_i32_132 : i32
    %c0_133 = arith.constant 0 : index
    %162 = arith.index_cast %159 : i32 to index
    %c0_134 = arith.constant 0 : index
    %c0_135 = arith.constant 0 : index
    %163 = vector.load %arg2[%c0_133, %162, %c0_134, %c0_135] : memref<1x3x4x128xf32, #tpu.memory_space<vmem>>, vector<1x1x4x128xf32>
    %164 = vector.shape_cast %163 : vector<1x1x4x128xf32> to vector<4x128xf32>
    %c80_i32_136 = arith.constant 80 : i32
    %165 = tpu.dynamic_rotate %164 by %c80_i32_136 dim 1 : vector<4x128xf32>, i32 -> vector<4x128xf32>
    %c0_137 = arith.constant 0 : index
    %166 = arith.index_cast %161 : i32 to index
    %c0_138 = arith.constant 0 : index
    %c0_139 = arith.constant 0 : index
    %167 = vector.load %arg2[%c0_137, %166, %c0_138, %c0_139] : memref<1x3x4x128xf32, #tpu.memory_space<vmem>>, vector<1x1x4x128xf32>
    %168 = vector.shape_cast %167 : vector<1x1x4x128xf32> to vector<4x128xf32>
    %c80_i32_140 = arith.constant 80 : i32
    %169 = tpu.dynamic_rotate %168 by %c80_i32_140 dim 1 : vector<4x128xf32>, i32 -> vector<4x128xf32>
    %c80_i32_141 = arith.constant 80 : i32
    %170 = vector.broadcast %c80_i32_141 : i32 to vector<4x128xi32>
    %171 = arith.cmpi slt, %1, %170 : vector<4x128xi32>
    %172 = arith.select %171, %165, %169 : vector<4x128xi1>, vector<4x128xf32>
    %c44 = arith.constant 44 : index
    %c0_142 = arith.constant 0 : index
    %173 = vector.load %arg5[%c44, %c0_142] : memref<64x128xf32, #tpu.memory_space<vmem>>, vector<4x128xf32>
    tpu.vector_store %arg5[%c44, %c0_142], %172 {strides = array<i32>} : memref<64x128xf32, #tpu.memory_space<vmem>>, vector<4x128xf32>,
    %c1_i32_143 = arith.constant 1 : i32
    %174 = arith.addi %0, %c1_i32_143 : i32
    %c0_i32_144 = arith.constant 0 : i32
    %175 = arith.addi %174, %c0_i32_144 : i32
    %c1_i32_145 = arith.constant 1 : i32
    %176 = arith.addi %175, %c1_i32_145 : i32
    %c2_i32_146 = arith.constant 2 : i32
    %177 = arith.minsi %176, %c2_i32_146 : i32
    %c0_147 = arith.constant 0 : index
    %178 = arith.index_cast %175 : i32 to index
    %c0_148 = arith.constant 0 : index
    %c0_149 = arith.constant 0 : index
    %179 = vector.load %arg2[%c0_147, %178, %c0_148, %c0_149] : memref<1x3x4x128xf32, #tpu.memory_space<vmem>>, vector<1x1x4x128xf32>
    %180 = vector.shape_cast %179 : vector<1x1x4x128xf32> to vector<4x128xf32>
    %c64_i32_150 = arith.constant 64 : i32
    %181 = tpu.dynamic_rotate %180 by %c64_i32_150 dim 1 : vector<4x128xf32>, i32 -> vector<4x128xf32>
    %c0_151 = arith.constant 0 : index
    %182 = arith.index_cast %177 : i32 to index
    %c0_152 = arith.constant 0 : index
    %c0_153 = arith.constant 0 : index
    %183 = vector.load %arg2[%c0_151, %182, %c0_152, %c0_153] : memref<1x3x4x128xf32, #tpu.memory_space<vmem>>, vector<1x1x4x128xf32>
    %184 = vector.shape_cast %183 : vector<1x1x4x128xf32> to vector<4x128xf32>
    %c64_i32_154 = arith.constant 64 : i32
    %185 = tpu.dynamic_rotate %184 by %c64_i32_154 dim 1 : vector<4x128xf32>, i32 -> vector<4x128xf32>
    %c64_i32_155 = arith.constant 64 : i32
    %186 = vector.broadcast %c64_i32_155 : i32 to vector<4x128xi32>
    %187 = arith.cmpi slt, %1, %186 : vector<4x128xi32>
    %188 = arith.select %187, %181, %185 : vector<4x128xi1>, vector<4x128xf32>
    %c48 = arith.constant 48 : index
    %c0_156 = arith.constant 0 : index
    %189 = vector.load %arg5[%c48, %c0_156] : memref<64x128xf32, #tpu.memory_space<vmem>>, vector<4x128xf32>
    tpu.vector_store %arg5[%c48, %c0_156], %188 {strides = array<i32>} : memref<64x128xf32, #tpu.memory_space<vmem>>, vector<4x128xf32>,
    %c1_i32_157 = arith.constant 1 : i32
    %190 = arith.addi %0, %c1_i32_157 : i32
    %c0_i32_158 = arith.constant 0 : i32
    %191 = arith.addi %190, %c0_i32_158 : i32
    %c1_i32_159 = arith.constant 1 : i32
    %192 = arith.addi %191, %c1_i32_159 : i32
    %c2_i32_160 = arith.constant 2 : i32
    %193 = arith.minsi %192, %c2_i32_160 : i32
    %c0_161 = arith.constant 0 : index
    %194 = arith.index_cast %191 : i32 to index
    %c0_162 = arith.constant 0 : index
    %c0_163 = arith.constant 0 : index
    %195 = vector.load %arg2[%c0_161, %194, %c0_162, %c0_163] : memref<1x3x4x128xf32, #tpu.memory_space<vmem>>, vector<1x1x4x128xf32>
    %196 = vector.shape_cast %195 : vector<1x1x4x128xf32> to vector<4x128xf32>
    %c48_i32_164 = arith.constant 48 : i32
    %197 = tpu.dynamic_rotate %196 by %c48_i32_164 dim 1 : vector<4x128xf32>, i32 -> vector<4x128xf32>
    %c0_165 = arith.constant 0 : index
    %198 = arith.index_cast %193 : i32 to index
    %c0_166 = arith.constant 0 : index
    %c0_167 = arith.constant 0 : index
    %199 = vector.load %arg2[%c0_165, %198, %c0_166, %c0_167] : memref<1x3x4x128xf32, #tpu.memory_space<vmem>>, vector<1x1x4x128xf32>
    %200 = vector.shape_cast %199 : vector<1x1x4x128xf32> to vector<4x128xf32>
    %c48_i32_168 = arith.constant 48 : i32
    %201 = tpu.dynamic_rotate %200 by %c48_i32_168 dim 1 : vector<4x128xf32>, i32 -> vector<4x128xf32>
    %c48_i32_169 = arith.constant 48 : i32
    %202 = vector.broadcast %c48_i32_169 : i32 to vector<4x128xi32>
    %203 = arith.cmpi slt, %1, %202 : vector<4x128xi32>
    %204 = arith.select %203, %197, %201 : vector<4x128xi1>, vector<4x128xf32>
    %c52 = arith.constant 52 : index
    %c0_170 = arith.constant 0 : index
    %205 = vector.load %arg5[%c52, %c0_170] : memref<64x128xf32, #tpu.memory_space<vmem>>, vector<4x128xf32>
    tpu.vector_store %arg5[%c52, %c0_170], %204 {strides = array<i32>} : memref<64x128xf32, #tpu.memory_space<vmem>>, vector<4x128xf32>,
    %c1_i32_171 = arith.constant 1 : i32
    %206 = arith.addi %0, %c1_i32_171 : i32
    %c0_i32_172 = arith.constant 0 : i32
    %207 = arith.addi %206, %c0_i32_172 : i32
    %c1_i32_173 = arith.constant 1 : i32
    %208 = arith.addi %207, %c1_i32_173 : i32
    %c2_i32_174 = arith.constant 2 : i32
    %209 = arith.minsi %208, %c2_i32_174 : i32
    %c0_175 = arith.constant 0 : index
    %210 = arith.index_cast %207 : i32 to index
    %c0_176 = arith.constant 0 : index
    %c0_177 = arith.constant 0 : index
    %211 = vector.load %arg2[%c0_175, %210, %c0_176, %c0_177] : memref<1x3x4x128xf32, #tpu.memory_space<vmem>>, vector<1x1x4x128xf32>
    %212 = vector.shape_cast %211 : vector<1x1x4x128xf32> to vector<4x128xf32>
    %c32_i32_178 = arith.constant 32 : i32
    %213 = tpu.dynamic_rotate %212 by %c32_i32_178 dim 1 : vector<4x128xf32>, i32 -> vector<4x128xf32>
    %c0_179 = arith.constant 0 : index
    %214 = arith.index_cast %209 : i32 to index
    %c0_180 = arith.constant 0 : index
    %c0_181 = arith.constant 0 : index
    %215 = vector.load %arg2[%c0_179, %214, %c0_180, %c0_181] : memref<1x3x4x128xf32, #tpu.memory_space<vmem>>, vector<1x1x4x128xf32>
    %216 = vector.shape_cast %215 : vector<1x1x4x128xf32> to vector<4x128xf32>
    %c32_i32_182 = arith.constant 32 : i32
    %217 = tpu.dynamic_rotate %216 by %c32_i32_182 dim 1 : vector<4x128xf32>, i32 -> vector<4x128xf32>
    %c32_i32_183 = arith.constant 32 : i32
    %218 = vector.broadcast %c32_i32_183 : i32 to vector<4x128xi32>
    %219 = arith.cmpi slt, %1, %218 : vector<4x128xi32>
    %220 = arith.select %219, %213, %217 : vector<4x128xi1>, vector<4x128xf32>
    %c56 = arith.constant 56 : index
    %c0_184 = arith.constant 0 : index
    %221 = vector.load %arg5[%c56, %c0_184] : memref<64x128xf32, #tpu.memory_space<vmem>>, vector<4x128xf32>
    tpu.vector_store %arg5[%c56, %c0_184], %220 {strides = array<i32>} : memref<64x128xf32, #tpu.memory_space<vmem>>, vector<4x128xf32>,
    %c1_i32_185 = arith.constant 1 : i32
    %222 = arith.addi %0, %c1_i32_185 : i32
    %c0_i32_186 = arith.constant 0 : i32
    %223 = arith.addi %222, %c0_i32_186 : i32
    %c1_i32_187 = arith.constant 1 : i32
    %224 = arith.addi %223, %c1_i32_187 : i32
    %c2_i32_188 = arith.constant 2 : i32
    %225 = arith.minsi %224, %c2_i32_188 : i32
    %c0_189 = arith.constant 0 : index
    %226 = arith.index_cast %223 : i32 to index
    %c0_190 = arith.constant 0 : index
    %c0_191 = arith.constant 0 : index
    %227 = vector.load %arg2[%c0_189, %226, %c0_190, %c0_191] : memref<1x3x4x128xf32, #tpu.memory_space<vmem>>, vector<1x1x4x128xf32>
    %228 = vector.shape_cast %227 : vector<1x1x4x128xf32> to vector<4x128xf32>
    %c16_i32_192 = arith.constant 16 : i32
    %229 = tpu.dynamic_rotate %228 by %c16_i32_192 dim 1 : vector<4x128xf32>, i32 -> vector<4x128xf32>
    %c0_193 = arith.constant 0 : index
    %230 = arith.index_cast %225 : i32 to index
    %c0_194 = arith.constant 0 : index
    %c0_195 = arith.constant 0 : index
    %231 = vector.load %arg2[%c0_193, %230, %c0_194, %c0_195] : memref<1x3x4x128xf32, #tpu.memory_space<vmem>>, vector<1x1x4x128xf32>
    %232 = vector.shape_cast %231 : vector<1x1x4x128xf32> to vector<4x128xf32>
    %c16_i32_196 = arith.constant 16 : i32
    %233 = tpu.dynamic_rotate %232 by %c16_i32_196 dim 1 : vector<4x128xf32>, i32 -> vector<4x128xf32>
    %c16_i32_197 = arith.constant 16 : i32
    %234 = vector.broadcast %c16_i32_197 : i32 to vector<4x128xi32>
    %235 = arith.cmpi slt, %1, %234 : vector<4x128xi32>
    %236 = arith.select %235, %229, %233 : vector<4x128xi1>, vector<4x128xf32>
    %c60 = arith.constant 60 : index
    %c0_198 = arith.constant 0 : index
    %237 = vector.load %arg5[%c60, %c0_198] : memref<64x128xf32, #tpu.memory_space<vmem>>, vector<4x128xf32>
    tpu.vector_store %arg5[%c60, %c0_198], %236 {strides = array<i32>} : memref<64x128xf32, #tpu.memory_space<vmem>>, vector<4x128xf32>,
    %c0_199 = arith.constant 0 : index
    %c0_200 = arith.constant 0 : index
    %238 = vector.load %arg5[%c0_199, %c0_200] : memref<64x128xf32, #tpu.memory_space<vmem>>, vector<64x128xf32>
    %239 = arith.truncf %238 : vector<64x128xf32> to vector<64x128xbf16>
    %c0_201 = arith.constant 0 : index
    %c0_202 = arith.constant 0 : index
    %240 = vector.load %arg3[%c0_201, %c0_202] : memref<128x256xbf16, #tpu.memory_space<vmem>>, vector<128x256xbf16>
    %cst = arith.constant dense<0.000000e+00> : vector<64x256xf32>
    %241 = tpu.matmul %239, %240, %cst {dimension_numbers = #tpu.dot_dimension_numbers<[1], [0], [0], [1], [0, 0, 1, 1], [], []>} : vector<64x128xbf16>, vector<128x256xbf16>, vector<64x256xf32> -> vector<64x256xf32>
    %242 = vector.extract_strided_slice %241 {offsets = [0, 0], sizes = [64, 128], strides = [1, 1]} : vector<64x256xf32> to vector<64x128xf32>
    %243 = vector.extract_strided_slice %241 {offsets = [0, 128], sizes = [64, 128], strides = [1, 1]} : vector<64x256xf32> to vector<64x128xf32>
    %244 = arith.mulf %242, %242 : vector<64x128xf32>
    %245 = arith.mulf %243, %243 : vector<64x128xf32>
    %246 = arith.addf %244, %245 : vector<64x128xf32>
    %247 = math.sqrt %246 : vector<64x128xf32>
    %248 = arith.truncf %247 : vector<64x128xf32> to vector<64x128xbf16>
    %c0_203 = arith.constant 0 : index
    %c0_204 = arith.constant 0 : index
    %c0_205 = arith.constant 0 : index
    %249 = vector.load %arg4[%c0_203, %c0_204, %c0_205] : memref<1x64x128xbf16, #tpu.memory_space<vmem>>, vector<1x64x128xbf16>
    %250 = vector.shape_cast %249 : vector<1x64x128xbf16> to vector<64x128xbf16>
    %251 = vector.shape_cast %248 : vector<64x128xbf16> to vector<1x64x128xbf16>
    tpu.vector_store %arg4[%c0_203, %c0_204, %c0_205], %251 {strides = array<i32>} : memref<1x64x128xbf16, #tpu.memory_space<vmem>>, vector<1x64x128xbf16>,
    return
  }
  func.func @transform_0(%arg0: i32, %arg1: i32) -> (i32, i32, i32, i32) {
    %c0_i32 = arith.constant 0 : i32
    %c0_i32_0 = arith.constant 0 : i32
    %c0_i32_1 = arith.constant 0 : i32
    %c0_i32_2 = arith.constant 0 : i32
    return %arg0, %c0_i32, %c0_i32_0, %c0_i32_1 : i32, i32, i32, i32
  }
  func.func @transform_1(%arg0: i32, %arg1: i32) -> (i32, i32) {
    %c0_i32 = arith.constant 0 : i32
    %c0_i32_0 = arith.constant 0 : i32
    %c0_i32_1 = arith.constant 0 : i32
    return %c0_i32, %c0_i32_0 : i32, i32
  }
  func.func @transform_2(%arg0: i32, %arg1: i32) -> (i32, i32, i32) {
    %c0_i32 = arith.constant 0 : i32
    %c0_i32_0 = arith.constant 0 : i32
    return %arg0, %arg1, %c0_i32 : i32, i32, i32
  }
}

</mosaic_0001>

<bundles_post_ra>
// kernel: sliding_fft_forward.1
= control target key start
LH: loop header
LB: loop body
LE: loop exit
PB: predicated region body
PF: predicated region fallthrough
CT: control target
= control target key end

     0   :  { %7 = vsyncpa [#allocation4], 0  ;;  %s999_s9 = smov 0   ;;  %s1001_s10 = smov 0   ;;  %s1153_s0 = inlined_call_operand.vmem [shape: f32[2,3,4,128], index: 0, kind: input, shape index: {}]   ;;  %s1154_s1 = inlined_call_operand.hbm [shape: bf16[128,256], index: 1, kind: input, shape index: {}]   ;;  %s1155_s2 = inlined_call_operand.vmem [shape: bf16[2,64,128], index: 2, kind: output, shape index: {}]  }
   0x1   :  { %s1003_s11 = smov 0  }
   0x2 LB: > { %s727_s12 = sadd.s32 4294967295, %s971_s11   ;;  %s25_s13 = sadd.s32 1, %s967_s10  ;;  %s971_s11 = sphi %s1003_s11, %s13_s11   ;;  %s967_s10 = sphi %s1001_s10, %s1159_s10   ;;  %s963_s9 = sphi %s999_s9, %s1158_s9  }
   0x3   : > { %p27_p0 = scmp.ge.s32.totalorder %s25_s13, 2  ;;  %p729_p1 = scmp.ge.s32.totalorder %s971_s11, 1 }
   0x4   : > { %p105_p2 = scmp.lt.s32.totalorder %s971_s11, 3  ;;  %p1024_p4 = scmp.eq.s32.totalorder %s727_s12, 0 }
   0x5   : > { %s1161_s13 = smov (%p27_p0, %s25_s13), 0  ;;  %s973_s16 = smov [#allocation3]  }
   0x6   : > { %p1020_p3 = pnand %p729_p1, %p105_p2  ;;  %s117_s17 = sshll.u32 %s973_s16, 4  ;;  %s118_s17 = int_to_ptr.vmem [resolvable:$true] %s117_s17 }
   0x7   : > { %s930_s18 = scalar_lea.vmem %s118_s17, 2048  ;;  %p938_p11 = scmp.lt.s32.totalorder %s118_s17, %s118_s17 }
   0x8   : > { %p838_p5 = pneg %p1020_p3  ;;  %p931_p8 = scmp.ne.s32.totalorder %s118_s17, %s930_s18 }
   0x9   : > { %p939_p12 = scmp.lt.s32.totalorder %s930_s18, %s930_s18 }
   0xa   : > { %p839_p6 = pnand %p1024_p4, %p838_p5 }
   0xb   : > { %p940_p13 = por %p939_p12, %p938_p11 }
   0xc   : > { %p921_p7 = pneg %p839_p6 }
   0xe   : > { %p933_p9 = pnand %p931_p8, %p921_p7 }
  0x10   : > { %p934_p10 = pneg %p933_p9 }
  0x12   : > { %p941_p0 = pnand %p940_p13, %p934_p10 }
  0x14   : > { %944 = shalt.err (!%p941_p0)
}
  0x15   : > { %s974_s19 = smov 128   ;;  %s975_s20 = smov 8  }
  0x16   : > { %841 = dma.hbm_to_vmem [thread:$0]  (!%p839_p6), %s1154_s1, 2048, %s118_s17, [#allocation4], %s974_s19, %s974_s19, %s975_s20  }
  0x17   : > { %141 = sbr.rel (%p1020_p3) target bundleno = 439 (0x1b7), region = 28 }
  0x1c   : > { %958 = dma.done.wait (%p1024_p4), [#allocation4], 2048  }
  0x1d   : > { %960 = vsyncadd (%p1024_p4), [#allocation4], 4294965248  ;;  %p167_p1 = scmp.lt.s32.totalorder %s963_s9, 1  ;;  %s976_s27 = smov 96   ;;  %v978_v6 = vmov 0   ;;  %v184_v47 = vlaneseq }
  0x1e   : > { %s977_s28 = smov 112   ;;  %463 = vmatprep.mubr.bf16.mxu0 %v978_v6  ;;  %483 = vmatprep.mubr.bf16.mxu1 %v978_v6  ;;  %s979_s29 = smov 80   ;;  %v879_v8 = vld [vmem:[#allocation3 + $0x74] ss:$8 sps:$4 sm:$0xff]   ;;  %v881_v10 = vld [vmem:[#allocation3 + $0x70] ss:$8 sps:$4 sm:$0xff]  }
  0x1f   : > { %s1163_s9 = smov (!%p167_p1, %s963_s9), 1  ;;  %431 = vmatprep.subr.bf16.mxu0 %v879_v8  ;;  %v882_v11 = vld [vmem:[#allocation3 + $0x64] ss:$8 sps:$4 sm:$0xff]   ;;  %817 = vmatprep.subr.bf16.mxu1 %v879_v8  ;;  %v884_v12 = vld [vmem:[#allocation3 + $0x60] ss:$8 sps:$4 sm:$0xff]   ;;  %s980_s30 = smov 64  }
  0x20   : > { %s833_s23 = smul.u32 12, %s1163_s9  ;;  %432 = vmatpush1.bf16.msra.mxu0 %v881_v10  ;;  %825 = vmatpush1.bf16.msra.mxu1 %v881_v10  ;;  %v885_v15 = vld [vmem:[#allocation3 + $0x54] ss:$8 sps:$4 sm:$0xff]   ;;  %v887_v16 = vld [vmem:[#allocation3 + $0x50] ss:$8 sps:$4 sm:$0xff]   ;;  %s981_s3 = smov 48  }
  0x21   : > { %433 = vmatprep.subr.bf16.mxu0 %v882_v11  ;;  %818 = vmatprep.subr.bf16.mxu1 %v882_v11  ;;  %v888_v19 = vld [vmem:[#allocation3 + $0x44] ss:$8 sps:$4 sm:$0xff]   ;;  %v890_v20 = vld [vmem:[#allocation3 + $0x40] ss:$8 sps:$4 sm:$0xff]   ;;  %v891_v25 = vld [vmem:[#allocation3 + $0x34] ss:$8 sps:$4 sm:$0xff]  }
  0x22   : > { %s1049_s26 = scalar_lea.vmem %s1153_s0, %s833_s23  ;;  %v893_v26 = vld [vmem:[#allocation3 + $0x30] ss:$8 sps:$4 sm:$0xff]   ;;  %v894_v29 = vld [vmem:[#allocation3 + $0x24] ss:$8 sps:$4 sm:$0xff]   ;;  %v896_v30 = vld [vmem:[#allocation3 + $0x20] ss:$8 sps:$4 sm:$0xff]  }
  0x23   : > { %v204_v0 = vld [vmem:[%s1049_s26] sm:$0xf]  ;;  %v738_v2 = vld [vmem:[%s1049_s26 + $0x4] sm:$0xf]  ;;  %v746_v7 = vld [vmem:[%s1049_s26 + $0x8] sm:$0xf] }
  0x24   : > { %v193_v1 = vld [vmem:[%s1049_s26] sm:$0xf]  ;;  %205 = vrot.lane.b32.xlu1 %v204_v0, %s976_s27  ;;  %v737_v3 = vld [vmem:[%s1049_s26 + $0x4] sm:$0xf]  ;;  %v748_v13 = vld [vmem:[%s1049_s26 + $0x8] sm:$0xf]  ;;  %434 = vmatpush1.bf16.msra.mxu0 %v884_v12 }
  0x25   : > { %194 = vrot.lane.b32.xlu0 %v193_v1, %s977_s28  ;;  %v739_v4 = vld [vmem:[%s1049_s26 + $0x4] sm:$0xf]  ;;  %v213_v5 = vld [vmem:[%s1049_s26] sm:$0xf]  ;;  %826 = vmatpush1.bf16.msra.mxu1 %v884_v12  ;;  %v750_v17 = vld [vmem:[%s1049_s26 + $0x8] sm:$0xf] }
  0x26   : > { %v745_v9 = vld [vmem:[%s1049_s26 + $0x4] sm:$0xf]  ;;  %435 = vmatprep.subr.bf16.mxu0 %v885_v15  ;;  %819 = vmatprep.subr.bf16.mxu1 %v885_v15  ;;  %v188_v21 = vld [vmem:[%s1049_s26] sm:$0xf]  ;;  %v897_v33 = vld [vmem:[#allocation3 + $0x14] ss:$8 sps:$4 sm:$0xff]  }
  0x27   : > { %v747_v14 = vld [vmem:[%s1049_s26 + $0x4] sm:$0xf]  ;;  %189 = vst [vmem:[#allocation2] sm:$0xf] %v188_v21  ;;  %v222_v24 = vld [vmem:[%s1049_s26] sm:$0xf] }
  0x28   : > { %208 = vrot.lane.b32.xlu1 %v738_v2, %s976_s27  ;;  %v749_v18 = vld [vmem:[%s1049_s26 + $0x4] sm:$0xf]  ;;  %436 = vmatpush1.bf16.msra.mxu0 %v887_v16  ;;  %v231_v28 = vld [vmem:[%s1049_s26] sm:$0xf]  ;;  %v899_v34 = vld [vmem:[#allocation3 + $0x10] ss:$8 sps:$4 sm:$0xff]  }
  0x29   : > { %199 = vrot.lane.b32.xlu0 %v737_v3, %s977_s28  ;;  %827 = vmatpush1.bf16.msra.mxu1 %v887_v16  ;;  %v744_v22 = vld [vmem:[%s1049_s26 + $0x4] sm:$0xf]  ;;  %v240_v32 = vld [vmem:[%s1049_s26] sm:$0xf]  ;;  %s982_s4 = smov 32   ;;  %s983_s5 = smov 16  }
  0x2a   : > { %261 = vst [vmem:[#allocation2 + $0x20] sm:$0xf] %v744_v22  ;;  %v740_v23 = vld [vmem:[%s1049_s26 + $0x4] sm:$0xf]  ;;  %437 = vmatprep.subr.bf16.mxu0 %v888_v19  ;;  %820 = vmatprep.subr.bf16.mxu1 %v888_v19  ;;  %v249_v36 = vld [vmem:[%s1049_s26] sm:$0xf] }
  0x2b   : > { %v741_v27 = vld [vmem:[%s1049_s26 + $0x4] sm:$0xf]  ;;  %v902_v38 = vld [vmem:[#allocation3] ss:$8 sps:$4 sm:$0xff]   ;;  %v1099_v48 = vand.u32 127, %v184_v47  ;;  %s785_s6 = sshll.u32 %s1163_s9, 5 }
  0x2c   : > { %217 = vrot.lane.b32.xlu1 %v739_v4, %s979_s29  ;;  %438 = vmatpush1.bf16.msra.mxu0 %v890_v20  ;;  %v742_v31 = vld [vmem:[%s1049_s26 + $0x4] sm:$0xf]  ;;  %v752_v39 = vld [vmem:[%s1049_s26 + $0x8] sm:$0xf]  ;;  %s1138_s12 = scalar_lea.vmem %s1155_s2, %s785_s6 }
  0x2d   : > { %214 = vrot.lane.b32.xlu0 %v213_v5, %s979_s29  ;;  %828 = vmatpush1.bf16.msra.mxu1 %v890_v20  ;;  %v743_v35 = vld [vmem:[%s1049_s26 + $0x4] sm:$0xf]  ;;  %v754_v41 = vld [vmem:[%s1049_s26 + $0x8] sm:$0xf]  ;;  %vm210_vm0 = vcmp.lt.s32.totalorder %v1099_v48, 96  ;;  %vm201_vm1 = vcmp.lt.s32.totalorder %v1099_v48, 112 }
  0x2e   : > { %439 = vmatprep.subr.bf16.mxu0 %v891_v25  ;;  %821 = vmatprep.subr.bf16.mxu1 %v891_v25  ;;  %v900_v37 = vld [vmem:[#allocation3 + $0x4] ss:$8 sps:$4 sm:$0xff]   ;;  %v756_v43 = vld [vmem:[%s1049_s26 + $0x8] sm:$0xf]  ;;  %vm219_vm2 = vcmp.lt.s32.totalorder %v1099_v48, 80  ;;  %vm228_vm3 = vcmp.lt.s32.totalorder %v1099_v48, 64 }
  0x2f   : > { %v751_v40 = vld [vmem:[%s1049_s26 + $0x4] sm:$0xf]  ;;  %v758_v45 = vld [vmem:[%s1049_s26 + $0x8] sm:$0xf]  ;;  %vm237_vm4 = vcmp.lt.s32.totalorder %v1099_v48, 48  ;;  %vm246_vm5 = vcmp.lt.s32.totalorder %v1099_v48, 32 }
  0x30   : > { %271 = vrot.lane.b32.xlu1 %v746_v7, %s977_s28  ;;  %440 = vmatpush1.bf16.msra.mxu0 %v893_v26  ;;  %v753_v42 = vld [vmem:[%s1049_s26 + $0x4] sm:$0xf]  ;;  %vm255_vm6 = vcmp.lt.s32.totalorder %v1099_v48, 16 }
  0x31   : > { %266 = vrot.lane.b32.xlu0 %v745_v9, %s977_s28  ;;  %829 = vmatpush1.bf16.msra.mxu1 %v893_v26  ;;  %v755_v44 = vld [vmem:[%s1049_s26 + $0x4] sm:$0xf] }
  0x32   : > { %441 = vmatprep.subr.bf16.mxu0 %v894_v29  ;;  %822 = vmatprep.subr.bf16.mxu1 %v894_v29  ;;  %v757_v46 = vld [vmem:[%s1049_s26 + $0x4] sm:$0xf] }
  0x34   : > { %279 = vrot.lane.b32.xlu1 %v748_v13, %s976_s27  ;;  %442 = vmatpush1.bf16.msra.mxu0 %v896_v30 }
  0x35   : > { %276 = vrot.lane.b32.xlu0 %v747_v14, %s976_s27  ;;  %830 = vmatpush1.bf16.msra.mxu1 %v896_v30 }
  0x36   : > { %443 = vmatprep.subr.bf16.mxu0 %v897_v33  ;;  %823 = vmatprep.subr.bf16.mxu1 %v897_v33 }
  0x38   : > { %287 = vrot.lane.b32.xlu1 %v750_v17, %s979_s29  ;;  %444 = vmatpush1.bf16.msra.mxu0 %v899_v34 }
  0x39   : > { %284 = vrot.lane.b32.xlu0 %v749_v18, %s979_s29  ;;  %831 = vmatpush1.bf16.msra.mxu1 %v899_v34 }
  0x3a   : > { %445 = vmatprep.subr.bf16.mxu0 %v900_v37  ;;  %824 = vmatprep.subr.bf16.mxu1 %v900_v37 }
  0x3c   : > { %226 = vrot.lane.b32.xlu1 %v740_v23, %s980_s30  ;;  %446 = vmatpush1.bf16.msra.mxu0 %v902_v38 }
  0x3d   : > { %223 = vrot.lane.b32.xlu0 %v222_v24, %s980_s30  ;;  %832 = vmatpush1.bf16.msra.mxu1 %v902_v38 }
  0x40   : > { %235 = vrot.lane.b32.xlu1 %v741_v27, %s981_s3 }
  0x41   : > { %232 = vrot.lane.b32.xlu0 %v231_v28, %s981_s3 }
  0x44   : > { %244 = vrot.lane.b32.xlu1 %v742_v31, %s982_s4 }
  0x45   : > { %241 = vrot.lane.b32.xlu0 %v240_v32, %s982_s4 }
  0x48   : > { %253 = vrot.lane.b32.xlu1 %v743_v35, %s983_s5 }
  0x49   : > { %250 = vrot.lane.b32.xlu0 %v249_v36, %s983_s5 }
  0x4c   : > { %295 = vrot.lane.b32.xlu1 %v752_v39, %s980_s30 }
  0x4d   : > { %292 = vrot.lane.b32.xlu0 %v751_v40, %s980_s30 }
  0x50   : > { %303 = vrot.lane.b32.xlu1 %v754_v41, %s981_s3 }
  0x51   : > { %300 = vrot.lane.b32.xlu0 %v753_v42, %s981_s3 }
  0x54   : > { %311 = vrot.lane.b32.xlu1 %v756_v43, %s982_s4 }
  0x55   : > { %308 = vrot.lane.b32.xlu0 %v755_v44, %s982_s4 }
  0x58   : > { %319 = vrot.lane.b32.xlu1 %v758_v45, %s983_s5 }
  0x59   : > { %316 = vrot.lane.b32.xlu0 %v757_v46, %s983_s5 }
  0x96   : > { %v206_v49 = vpop.permute.xlu1 %205 }
  0x97   : > { %v195_v50 = vpop.permute.xlu0 %194 }
  0x9a   : > { %v209_v51 = vpop.permute.xlu1 %208 }
  0x9b   : > { %v200_v52 = vpop.permute.xlu0 %199  ;;  %v211_v53 = vsel %vm210_vm0, %v206_v49, %v209_v51 }
  0x9c   : > { %v202_v54 = vsel %vm201_vm1, %v195_v50, %v200_v52  ;;  %212 = vst [vmem:[#allocation2 + $0x8] sm:$0xf] %v211_v53 }
  0x9d   : > { %203 = vst [vmem:[#allocation2 + $0x4] sm:$0xf] %v202_v54 }
  0x9e   : > { %v218_v55 = vpop.permute.xlu1 %217 }
  0x9f   : > { %v215_v56 = vpop.permute.xlu0 %214 }
  0xa0   : > { %v220_v57 = vsel %vm219_vm2, %v215_v56, %v218_v55 }
  0xa1   : > { %221 = vst [vmem:[#allocation2 + $0xc] sm:$0xf] %v220_v57 }
  0xa2   : > { %v272_v58 = vpop.permute.xlu1 %271 }
  0xa3   : > { %v267_v59 = vpop.permute.xlu0 %266 }
  0xa4   : > { %v273_v60 = vsel %vm201_vm1, %v267_v59, %v272_v58  ;;  %v323_v0 = vld [vmem:[#allocation2] sm:$0xff] }
  0xa5   : > { %274 = vst [vmem:[#allocation2 + $0x24] sm:$0xf] %v273_v60 }
  0xa6   : > { %v280_v61 = vpop.permute.xlu1 %279 }
  0xa7   : > { %v277_v62 = vpop.permute.xlu0 %276 }
  0xa8   : > { %v281_v63 = vsel %vm210_vm0, %v277_v62, %v280_v61  ;;  %v324_v1 = vld [vmem:[#allocation2 + $0x8] sm:$0xff] }
  0xa9   : > { %282 = vst [vmem:[#allocation2 + $0x28] sm:$0xf] %v281_v63  ;;  %v331_v2 = vpack.c.bf16 %v324_v1, %v323_v0 }
  0xaa   : > { %v288_v3 = vpop.permute.xlu1 %287 }
  0xab   : > { %v285_v4 = vpop.permute.xlu0 %284  ;;  %464 = vmatmul.mubr.bf16.vlgmr.msra.gmra.mxu0 %v331_v2 }
  0xac   : > { %v289_v5 = vsel %vm219_vm2, %v285_v4, %v288_v3  ;;  %473 = vmatprep.mubr.bf16.mxu0 %v978_v6  ;;  %v327_v13 = vld [vmem:[#allocation2 + $0x20] sm:$0xff] }
  0xad   : > { %290 = vst [vmem:[#allocation2 + $0x2c] sm:$0xf] %v289_v5 }
  0xae   : > { %v227_v7 = vpop.permute.xlu1 %226 }
  0xaf   : > { %v224_v8 = vpop.permute.xlu0 %223 }
  0xb0   : > { %v229_v9 = vsel %vm228_vm3, %v224_v8, %v227_v7 }
  0xb1   : > { %230 = vst [vmem:[#allocation2 + $0x10] sm:$0xf] %v229_v9 }
  0xb2   : > { %v236_v10 = vpop.permute.xlu1 %235 }
  0xb3   : > { %v233_v11 = vpop.permute.xlu0 %232 }
  0xb4   : > { %v238_v12 = vsel %vm237_vm4, %v233_v11, %v236_v10  ;;  %v328_v14 = vld [vmem:[#allocation2 + $0x28] sm:$0xff] }
  0xb5   : > { %239 = vst [vmem:[#allocation2 + $0x14] sm:$0xf] %v238_v12  ;;  %v333_v15 = vpack.c.bf16 %v328_v14, %v327_v13 }
  0xb6   : > { %v245_v16 = vpop.permute.xlu1 %244 }
  0xb7   : > { %484 = vmatmul.mubr.bf16.vlgmr.msra.gmra.mxu1 %v333_v15  ;;  %v242_v17 = vpop.permute.xlu0 %241 }
  0xb8   : > { %v247_v18 = vsel %vm246_vm5, %v242_v17, %v245_v16  ;;  %493 = vmatprep.mubr.bf16.mxu1 %v978_v6 }
  0xb9   : > { %248 = vst [vmem:[#allocation2 + $0x18] sm:$0xf] %v247_v18 }
  0xba   : > { %v254_v19 = vpop.permute.xlu1 %253 }
  0xbb   : > { %v251_v20 = vpop.permute.xlu0 %250 }
  0xbc   : > { %v256_v21 = vsel %vm255_vm6, %v251_v20, %v254_v19  ;;  %v325_v27 = vld [vmem:[#allocation2 + $0x10] sm:$0xff] }
  0xbd   : > { %257 = vst [vmem:[#allocation2 + $0x1c] sm:$0xf] %v256_v21 }
  0xbe   : > { %v296_v22 = vpop.permute.xlu1 %295 }
  0xbf   : > { %v293_v23 = vpop.permute.xlu0 %292 }
  0xc0   : > { %v297_v24 = vsel %vm228_vm3, %v293_v23, %v296_v22 }
  0xc1   : > { %298 = vst [vmem:[#allocation2 + $0x30] sm:$0xf] %v297_v24 }
  0xc2   : > { %v304_v25 = vpop.permute.xlu1 %303 }
  0xc3   : > { %v301_v26 = vpop.permute.xlu0 %300 }
  0xc4   : > { %v305_v6 = vsel %vm237_vm4, %v301_v26, %v304_v25  ;;  %v326_v28 = vld [vmem:[#allocation2 + $0x18] sm:$0xff] }
  0xc5   : > { %306 = vst [vmem:[#allocation2 + $0x34] sm:$0xf] %v305_v6  ;;  %v332_v29 = vpack.c.bf16 %v326_v28, %v325_v27 }
  0xc6   : > { %v312_v30 = vpop.permute.xlu1 %311 }
  0xc7   : > { %v309_v31 = vpop.permute.xlu0 %308  ;;  %474 = vmatmul.mubr.bf16.gmra.mxu0 %v332_v29 }
  0xc8   : > { %v313_v32 = vsel %vm246_vm5, %v309_v31, %v312_v30 }
  0xc9   : > { %314 = vst [vmem:[#allocation2 + $0x38] sm:$0xf] %v313_v32 }
  0xca   : > { %v320_v33 = vpop.permute.xlu1 %319 }
  0xcb   : > { %v317_v34 = vpop.permute.xlu0 %316 }
  0xcc   : > { %v321_v35 = vsel %vm255_vm6, %v317_v34, %v320_v33  ;;  %v329_v36 = vld [vmem:[#allocation2 + $0x30] sm:$0xff] }
  0xcd   : > { %322 = vst [vmem:[#allocation2 + $0x3c] sm:$0xf] %v321_v35 }
  0xd4   : > { %v330_v37 = vld [vmem:[#allocation2 + $0x38] sm:$0xff] }
  0xd5   : > { %v334_v38 = vpack.c.bf16 %v330_v37, %v329_v36 }
  0xd7   : > { %494 = vmatmul.mubr.bf16.gmra.mxu1 %v334_v38 }
 0x16b   : > { %v465_v39 = vpop.f32.mrf.mxu0 }
 0x16c   : > { %v504_v41 = vmul.f32 %v465_v39, %v465_v39 }
 0x16d   : > { %v467_v40 = vpop.f32.mrf.mxu0 }
 0x16e   : > { %v512_v42 = vmul.f32 %v467_v40, %v467_v40 }
 0x16f   : > { %v469_v43 = vpop.f32.mrf.mxu0 }
 0x170   : > { %v520_v44 = vadd.f32 %v512_v42, %v504_v41  ;;  %v505_v46 = vmul.f32 %v469_v43, %v469_v43 }
 0x171   : > { %v471_v45 = vpop.f32.mrf.mxu0 }
 0x172   : > { %903 = vrsqrt.f32 %v520_v44  ;;  %v513_v47 = vmul.f32 %v471_v45, %v471_v45  ;;  %vm530_vm7 = vcmp.eq.f32.partialorder %v520_v44, inf  ;;  %v533_v0 = vand.u32 2147483648, %v520_v44 }
 0x173   : > { %vm532_vm9 = vcmp.eq.f32.partialorder %v520_v44, 0.0 }
 0x174   : > { %v521_v49 = vadd.f32 %v513_v47, %v505_v46 }
 0x176   : > { %905 = vrsqrt.f32 %v521_v49  ;;  %vm537_vm8 = vcmp.eq.f32.partialorder %v521_v49, inf  ;;  %v540_v1 = vand.u32 2147483648, %v521_v49  ;;  %vm539_vm10 = vcmp.eq.f32.partialorder %v521_v49, 0.0 }
 0x177   : > { %v485_v50 = vpop.f32.mrf.mxu1 }
 0x178   : > { %v508_v51 = vmul.f32 %v485_v50, %v485_v50 }
 0x179   : > { %v487_v48 = vpop.f32.mrf.mxu1 }
 0x17a   : > { %v516_v52 = vmul.f32 %v487_v48, %v487_v48 }
 0x17b   : > { %v489_v53 = vpop.f32.mrf.mxu1 }
 0x17c   : > { %v524_v54 = vadd.f32 %v516_v52, %v508_v51  ;;  %v509_v57 = vmul.f32 %v489_v53, %v489_v53 }
 0x17d   : > { %v491_v55 = vpop.f32.mrf.mxu1 }
 0x17e   : > { %907 = vrsqrt.f32 %v524_v54  ;;  %v517_v58 = vmul.f32 %v491_v55, %v491_v55  ;;  %vm558_vm11 = vcmp.eq.f32.partialorder %v524_v54, inf  ;;  %v561_v22 = vand.u32 2147483648, %v524_v54 }
 0x17f   : > { %v904_v56 = vpop.eup %903  ;;  %vm560_vm13 = vcmp.eq.f32.partialorder %v524_v54, 0.0 }
 0x180   : > { %v529_v59 = vmul.f32 %v904_v56, %v520_v44  ;;  %v525_v60 = vadd.f32 %v517_v58, %v509_v57 }
 0x182   : > { %909 = vrsqrt.f32 %v525_v60  ;;  %v531_v62 = vsel %vm530_vm7, %v520_v44, %v529_v59  ;;  %vm565_vm12 = vcmp.eq.f32.partialorder %v525_v60, inf  ;;  %v568_v23 = vand.u32 2147483648, %v525_v60 }
 0x183   : > { %v906_v61 = vpop.eup %905  ;;  %v534_v4 = vsel %vm532_vm9, %v533_v0, %v531_v62  ;;  %vm567_vm14 = vcmp.eq.f32.partialorder %v525_v60, 0.0 }
 0x184   : > { %v536_v63 = vmul.f32 %v906_v61, %v521_v49 }
 0x186   : > { %v538_v2 = vsel %vm537_vm8, %v521_v49, %v536_v63 }
 0x187   : > { %v475_v3 = vpop.f32.mrf.mxu0  ;;  %v541_v5 = vsel %vm539_vm10, %v540_v1, %v538_v2 }
 0x188   : > { %v797_v7 = vpack.c.bf16 %v541_v5, %v534_v4  ;;  %v506_v9 = vmul.f32 %v475_v3, %v475_v3 }
 0x189   : > { %v477_v8 = vpop.f32.mrf.mxu0 }
 0x18a   : > { %v514_v10 = vmul.f32 %v477_v8, %v477_v8  ;;  %798 = vst [vmem:[%s1138_s12] sm:$0xff] %v797_v7  }
 0x18b   : > { %v908_v11 = vpop.eup %907  ;;  %v479_v12 = vpop.f32.mrf.mxu0 }
 0x18c   : > { %v522_v13 = vadd.f32 %v514_v10, %v506_v9  ;;  %v557_v14 = vmul.f32 %v908_v11, %v524_v54  ;;  %v507_v16 = vmul.f32 %v479_v12, %v479_v12 }
 0x18d   : > { %v481_v15 = vpop.f32.mrf.mxu0 }
 0x18e   : > { %911 = vrsqrt.f32 %v522_v13  ;;  %v515_v17 = vmul.f32 %v481_v15, %v481_v15  ;;  %v559_v19 = vsel %vm558_vm11, %v524_v54, %v557_v14  ;;  %vm544_vm15 = vcmp.eq.f32.partialorder %v522_v13, inf }
 0x18f   : > { %v910_v18 = vpop.eup %909  ;;  %v562_v25 = vsel %vm560_vm13, %v561_v22, %v559_v19  ;;  %v547_v42 = vand.u32 2147483648, %v522_v13  ;;  %vm546_vm1 = vcmp.eq.f32.partialorder %v522_v13, 0.0 }
 0x190   : > { %v564_v20 = vmul.f32 %v910_v18, %v525_v60  ;;  %v523_v21 = vadd.f32 %v515_v17, %v507_v16 }
 0x192   : > { %v566_v24 = vsel %vm565_vm12, %v525_v60, %v564_v20  ;;  %913 = vrsqrt.f32 %v523_v21  ;;  %vm551_vm0 = vcmp.eq.f32.partialorder %v523_v21, inf  ;;  %v554_v43 = vand.u32 2147483648, %v523_v21 }
 0x193   : > { %v569_v26 = vsel %vm567_vm14, %v568_v23, %v566_v24  ;;  %vm553_vm2 = vcmp.eq.f32.partialorder %v523_v21, 0.0 }
 0x194   : > { %v807_v6 = vpack.c.bf16 %v569_v26, %v562_v25 }
 0x196   : > { %815 = vst [vmem:[%s1138_s12 + $0x10] sm:$0xff] %v807_v6  }
 0x197   : > { %v495_v27 = vpop.f32.mrf.mxu1 }
 0x198   : > { %v510_v29 = vmul.f32 %v495_v27, %v495_v27 }
 0x199   : > { %v497_v28 = vpop.f32.mrf.mxu1 }
 0x19a   : > { %v518_v30 = vmul.f32 %v497_v28, %v497_v28 }
 0x19b   : > { %v912_v31 = vpop.eup %911  ;;  %v499_v32 = vpop.f32.mrf.mxu1 }
 0x19c   : > { %v526_v33 = vadd.f32 %v518_v30, %v510_v29  ;;  %v543_v34 = vmul.f32 %v912_v31, %v522_v13  ;;  %v511_v36 = vmul.f32 %v499_v32, %v499_v32 }
 0x19d   : > { %v501_v35 = vpop.f32.mrf.mxu1 }
 0x19e   : > { %915 = vrsqrt.f32 %v526_v33  ;;  %v519_v37 = vmul.f32 %v501_v35, %v501_v35  ;;  %v545_v39 = vsel %vm544_vm15, %v522_v13, %v543_v34  ;;  %vm572_vm3 = vcmp.eq.f32.partialorder %v526_v33, inf }
 0x19f   : > { %v914_v38 = vpop.eup %913  ;;  %v548_v45 = vsel %vm546_vm1, %v547_v42, %v545_v39  ;;  %v575_v53 = vand.u32 2147483648, %v526_v33  ;;  %vm574_vm5 = vcmp.eq.f32.partialorder %v526_v33, 0.0 }
 0x1a0   : > { %v550_v40 = vmul.f32 %v914_v38, %v523_v21  ;;  %v527_v41 = vadd.f32 %v519_v37, %v511_v36 }
 0x1a2   : > { %v552_v44 = vsel %vm551_vm0, %v523_v21, %v550_v40  ;;  %917 = vrsqrt.f32 %v527_v41  ;;  %vm579_vm4 = vcmp.eq.f32.partialorder %v527_v41, inf  ;;  %v582_v54 = vand.u32 2147483648, %v527_v41 }
 0x1a3   : > { %v555_v46 = vsel %vm553_vm2, %v554_v43, %v552_v44  ;;  %vm581_vm6 = vcmp.eq.f32.partialorder %v527_v41, 0.0 }
 0x1a4   : > { %v802_v47 = vpack.c.bf16 %v555_v46, %v548_v45 }
 0x1a6   : > { %814 = vst [vmem:[%s1138_s12 + $0x8] sm:$0xff] %v802_v47  }
 0x1ab   : > { %v916_v49 = vpop.eup %915 }
 0x1ac   : > { %v571_v50 = vmul.f32 %v916_v49, %v526_v33 }
 0x1ae   : > { %v573_v51 = vsel %vm572_vm3, %v526_v33, %v571_v50 }
 0x1af   : > { %v918_v48 = vpop.eup %917  ;;  %v576_v56 = vsel %vm574_vm5, %v575_v53, %v573_v51 }
 0x1b0   : > { %v578_v52 = vmul.f32 %v918_v48, %v527_v41 }
 0x1b2   : > { %v580_v55 = vsel %vm579_vm4, %v527_v41, %v578_v52 }
 0x1b3   : > { %v583_v57 = vsel %vm581_vm6, %v582_v54, %v580_v55 }
 0x1b4   : > { %v812_v58 = vpack.c.bf16 %v583_v57, %v576_v56 }
 0x1b6   : > { %816 = vst [vmem:[%s1138_s12 + $0x18] sm:$0xff] %v812_v58  }
 0x1b7 PF: > { %s13_s11 = sadd.s32 1, %s971_s11   ;;  %s1158_s9 = smov %s967_s10 }
 0x1b8   : > { %p10_p2 = scmp.ge.s32.totalorder %s13_s11, 4   ;;  %s1159_s10 = smov %s1161_s13 }
 0x1ba   :  { %12 = sbr.rel (!%p10_p2) target bundleno = 2 (0x2), region = 67 }
 0x1bf   :  { %654 = vsyncpa [#allocation4], 1 }
 0x1c0   :  { %656 = vsyncpa [#allocation4 + $0x1], 1 }

</bundles_post_ra>
